<compile_context>
chip_gen: v6e
topology: v6e:2x2x1
jax: 0.10.0
libtpu: 0.0.40
codegen_flags: <defaults>
</compile_context>

<pallas_src>
import functools

import jax
import jax.numpy as jnp
import numpy as np
from jax.experimental import pallas as pl
from jax.experimental.pallas import tpu as pltpu


# ------------------------------ fused kernel ------------------------------- #
def _gcn_fused_kernel(x_ref, at_ref, w_ref, b_ref, o_ref, terms_ref, *,
                      support_len, order, c_in):
    """One M-tile of the fused gcn forward.

    x_ref     : (C, V, TM)        input tile, layout [c, v, n*L + l]
    at_ref    : (S, V, V)         transposed supports A_s^T (VMEM resident)
    w_ref     : (Cout, K*C)       1x1-conv weight, concat channel order
    b_ref     : (Cout, 1)         1x1-conv bias
    o_ref     : (1, Cout, V*TM)   output tile (lane-dense store)
    terms_ref : (K*C, V, TM)      VMEM scratch holding the "concat" terms
    """
    C = c_in
    x0 = x_ref[...]                                       # (C, V, TM) fp32
    terms_ref[0:C] = x0                                   # concat term 0: x

    k = 1
    for s in range(support_len):
        # A_s^T broadcast over channels -> batched (over c) MXU matmul.
        at_b = jnp.broadcast_to(at_ref[s][None, :, :],
                                (C,) + at_ref.shape[1:])  # (C, V, V)
        t = x0
        for _ in range(order):
            # t[c, w, m] = sum_v A_s[v, w] * t[c, v, m]   (graph diffusion)
            t = jnp.einsum('cwv,cvm->cwm', at_b, t,
                           preferred_element_type=jnp.float32)
            terms_ref[k * C:(k + 1) * C] = t
            k += 1

    # 1x1 conv over the (never HBM-materialized) concat: one big MXU matmul
    # with contraction K = K*C, output lane-dense over V*TM.
    kc, v, tm = terms_ref.shape
    h2 = terms_ref[...].reshape(kc, v * tm)               # 2D view of concat
    acc = jnp.dot(w_ref[...], h2, preferred_element_type=jnp.float32)
    acc = acc + b_ref[...]                                # bias (broadcast)
    o_ref[0] = acc.astype(o_ref.dtype)


# ------------------------------ host wrapper ------------------------------- #
def _choose_tile(m_total, kc, v):
    """Pick the M-tile size: full array when small, otherwise a multiple of 128
    sized so the (K*C, V, TM) scratch stays well inside v7x's 64 MiB VMEM."""
    if m_total <= 512:
        return m_total, m_total
    tm = 512
    while tm > 128 and (kc * v * tm * 4) > (24 << 20):
        tm //= 2
    m_pad = ((m_total + tm - 1) // tm) * tm
    return tm, m_pad


def gcn_forward(x, support, weight, bias, order=2):
    """Fused Pallas implementation of gcn.forward (inference)."""
    N, C, V, L = x.shape
    S = len(support)
    K = order * S + 1
    Cout, KC = weight.shape
    assert KC == K * C, (KC, K, C)

    M = N * L
    TM, Mpad = _choose_tile(M, K * C, V)
    num_tiles = Mpad // TM

    # ---- host-side layout prep (one transpose in, one transpose out) ------
    # x: (N, C, V, L) -> (C, V, M) with the fused token index m = n*L + l.
    xm = jnp.transpose(x, (1, 2, 0, 3)).reshape(C, V, M)
    if Mpad != M:
        xm = jnp.pad(xm, ((0, 0), (0, 0), (0, Mpad - M)))
    at = jnp.stack([a.T for a in support])                # (S, V, V) = A^T
    b2 = bias.reshape(Cout, 1).astype(jnp.float32)

    kernel = functools.partial(_gcn_fused_kernel,
                               support_len=S, order=order, c_in=C)

    out = pl.pallas_call(
        kernel,
        out_shape=jax.ShapeDtypeStruct((num_tiles, Cout, V * TM), x.dtype),
        grid_spec=pltpu.PrefetchScalarGridSpec(
            num_scalar_prefetch=0,
            grid=(num_tiles,),
            in_specs=[
                pl.BlockSpec((C, V, TM), lambda i: (0, 0, i)),    # x tile
                pl.BlockSpec((S, V, V), lambda i: (0, 0, 0)),     # A^T resident
                pl.BlockSpec((Cout, KC), lambda i: (0, 0)),       # W   resident
                pl.BlockSpec((Cout, 1), lambda i: (0, 0)),        # bias
            ],
            out_specs=pl.BlockSpec((1, Cout, V * TM), lambda i: (i, 0, 0)),
            scratch_shapes=[pltpu.VMEM((K * C, V, TM), jnp.float32)],
        ),
        compiler_params=pltpu.CompilerParams(
            dimension_semantics=("parallel",),
            vmem_limit_bytes=64 * 1024 * 1024,
        ),
    )(xm, at, weight, b2)

    # ---- undo the lane-friendly layout: (tiles, Cout, V*TM) -> (N,Cout,V,L)
    y = out.reshape(num_tiles, Cout, V, TM)
    y = jnp.transpose(y, (1, 2, 0, 3)).reshape(Cout, V, Mpad)[:, :, :M]
    y = y.reshape(Cout, V, N, L)
    y = jnp.transpose(y, (2, 0, 1, 3))
    # TODO(synk): training-mode F.dropout is stochastic; inference dropout is
    # the identity and is therefore omitted from the deterministic forward.
    return y


# ------------------------------- reference --------------------------------- #
def gcn_reference(x, support, weight, bias, order=2):
    out = [x]
    for a in support:
        x1 = jnp.einsum('ncvl,vw->ncwl', x, a)
        out.append(x1)
        for _ in range(2, order + 1):
            x2 = jnp.einsum('ncvl,vw->ncwl', x1, a)
            out.append(x2)
            x1 = x2
    h = jnp.concatenate(out, axis=1)
    return jnp.einsum('ncvl,oc->novl', h, weight) + bias[None, :, None, None]


# --------------------------------- main ------------------------------------ #
if __name__ == "__main__":
    # batch N=2, c_in=4, nodes V=16, seq L=8, support_len=3, order=2, c_out=8
    N, C_IN, V, L = 2, 4, 16, 8
    SUPPORT_LEN, ORDER, C_OUT = 3, 2, 8
    C_CAT = (ORDER * SUPPORT_LEN + 1) * C_IN  # 28

    key = jax.random.PRNGKey(0)
    kx, kw, kb, *ks = jax.random.split(key, 3 + SUPPORT_LEN)

    x = jax.random.normal(kx, (N, C_IN, V, L), dtype=jnp.float32)
    support = [
        jax.nn.softmax(jax.random.normal(k, (V, V), dtype=jnp.float32), axis=-1)
        for k in ks
    ]
    # Conv2d(C_CAT, C_OUT, kernel_size=(1,1)) params, squeezed to 2D.
    weight = 0.1 * jax.random.normal(kw, (C_OUT, C_CAT), dtype=jnp.float32)
    bias = 0.1 * jax.random.normal(kb, (C_OUT,), dtype=jnp.float32)

    fwd = jax.jit(functools.partial(gcn_forward, order=ORDER))
    out = fwd(x, support, weight, bias)
    jax.block_until_ready(out)

    ref = gcn_reference(x, support, weight, bias, order=ORDER)
    assert out.shape == (N, C_OUT, V, L), out.shape
    np.testing.assert_allclose(np.asarray(out), np.asarray(ref),
                               rtol=1e-5, atol=1e-5)

    print("KERNEL_OK")
</pallas_src>

<mosaic_0001>
module attributes {stable_mosaic.version = 11 : i64} {
  func.func @_gcn_fused_kernel(%arg0: i32, %arg1: memref<4x16x16xf32, #tpu.memory_space<vmem>>, %arg2: memref<3x16x16xf32, #tpu.memory_space<vmem>>, %arg3: memref<8x28xf32, #tpu.memory_space<vmem>>, %arg4: memref<8x1xf32, #tpu.memory_space<vmem>>, %arg5: memref<1x8x256xf32, #tpu.memory_space<vmem>>, %arg6: memref<28x16x16xf32, #tpu.memory_space<vmem>>) attributes {dimension_semantics = [#tpu.dimension_semantics<parallel>], iteration_bounds = array<i64: 1>, scalar_prefetch = 0 : i64, scratch_operands = 1 : i64, tpu.core_type = #tpu.core_type<tc>, window_params = [{transform_indices = @transform_0, window_bounds = array<i64: 4, 16, 16>}, {pipeline_mode = #tpu.pipeline_mode<synchronous>, transform_indices = @transform_1, window_bounds = array<i64: 3, 16, 16>}, {pipeline_mode = #tpu.pipeline_mode<synchronous>, transform_indices = @transform_2, window_bounds = array<i64: 8, 28>}, {pipeline_mode = #tpu.pipeline_mode<synchronous>, transform_indices = @transform_3, window_bounds = array<i64: 8, 1>}, {transform_indices = @transform_4, window_bounds = array<i64: 1, 8, 256>}]} {
    %c0 = arith.constant 0 : index
    %c0_0 = arith.constant 0 : index
    %c0_1 = arith.constant 0 : index
    %0 = vector.load %arg1[%c0, %c0_0, %c0_1] : memref<4x16x16xf32, #tpu.memory_space<vmem>>, vector<4x16x16xf32>
    %c0_2 = arith.constant 0 : index
    %c0_3 = arith.constant 0 : index
    %c0_4 = arith.constant 0 : index
    %1 = vector.load %arg6[%c0_2, %c0_3, %c0_4] : memref<28x16x16xf32, #tpu.memory_space<vmem>>, vector<4x16x16xf32>
    tpu.vector_store %arg6[%c0_2, %c0_3, %c0_4], %0 {strides = array<i32>} : memref<28x16x16xf32, #tpu.memory_space<vmem>>, vector<4x16x16xf32>,
    %c0_5 = arith.constant 0 : index
    %c0_6 = arith.constant 0 : index
    %c0_7 = arith.constant 0 : index
    %2 = vector.load %arg2[%c0_5, %c0_6, %c0_7] : memref<3x16x16xf32, #tpu.memory_space<vmem>>, vector<1x16x16xf32>
    %3 = vector.shape_cast %2 : vector<1x16x16xf32> to vector<16x16xf32>
    %4 = vector.shape_cast %3 : vector<16x16xf32> to vector<1x16x16xf32>
    %5 = vector.shape_cast %4 : vector<1x16x16xf32> to vector<1x16x16xf32>
    %6 = vector.broadcast %5 : vector<1x16x16xf32> to vector<4x16x16xf32>
    "tpu.trace_start"() <{level = 10 : i32, message = "cwv,cvm->cwm"}> : () -> ()
    %cst = arith.constant dense<0.000000e+00> : vector<4x16x16xf32>
    %7 = tpu.matmul %6, %0, %cst {dimension_numbers = #tpu.dot_dimension_numbers<[2], [1], [1], [2], [0, 0, 0, 1, 1, 2], [0], [0]>} : vector<4x16x16xf32>, vector<4x16x16xf32>, vector<4x16x16xf32> -> vector<4x16x16xf32>
    "tpu.trace_stop"() : () -> ()
    %c4 = arith.constant 4 : index
    %c0_8 = arith.constant 0 : index
    %c0_9 = arith.constant 0 : index
    %8 = vector.load %arg6[%c4, %c0_8, %c0_9] : memref<28x16x16xf32, #tpu.memory_space<vmem>>, vector<4x16x16xf32>
    tpu.vector_store %arg6[%c4, %c0_8, %c0_9], %7 {strides = array<i32>} : memref<28x16x16xf32, #tpu.memory_space<vmem>>, vector<4x16x16xf32>,
    "tpu.trace_start"() <{level = 10 : i32, message = "cwv,cvm->cwm"}> : () -> ()
    %cst_10 = arith.constant dense<0.000000e+00> : vector<4x16x16xf32>
    %9 = tpu.matmul %6, %7, %cst_10 {dimension_numbers = #tpu.dot_dimension_numbers<[2], [1], [1], [2], [0, 0, 0, 1, 1, 2], [0], [0]>} : vector<4x16x16xf32>, vector<4x16x16xf32>, vector<4x16x16xf32> -> vector<4x16x16xf32>
    "tpu.trace_stop"() : () -> ()
    %c8 = arith.constant 8 : index
    %c0_11 = arith.constant 0 : index
    %c0_12 = arith.constant 0 : index
    %10 = vector.load %arg6[%c8, %c0_11, %c0_12] : memref<28x16x16xf32, #tpu.memory_space<vmem>>, vector<4x16x16xf32>
    tpu.vector_store %arg6[%c8, %c0_11, %c0_12], %9 {strides = array<i32>} : memref<28x16x16xf32, #tpu.memory_space<vmem>>, vector<4x16x16xf32>,
    %c1 = arith.constant 1 : index
    %c0_13 = arith.constant 0 : index
    %c0_14 = arith.constant 0 : index
    %11 = vector.load %arg2[%c1, %c0_13, %c0_14] : memref<3x16x16xf32, #tpu.memory_space<vmem>>, vector<1x16x16xf32>
    %12 = vector.shape_cast %11 : vector<1x16x16xf32> to vector<16x16xf32>
    %13 = vector.shape_cast %12 : vector<16x16xf32> to vector<1x16x16xf32>
    %14 = vector.shape_cast %13 : vector<1x16x16xf32> to vector<1x16x16xf32>
    %15 = vector.broadcast %14 : vector<1x16x16xf32> to vector<4x16x16xf32>
    "tpu.trace_start"() <{level = 10 : i32, message = "cwv,cvm->cwm"}> : () -> ()
    %cst_15 = arith.constant dense<0.000000e+00> : vector<4x16x16xf32>
    %16 = tpu.matmul %15, %0, %cst_15 {dimension_numbers = #tpu.dot_dimension_numbers<[2], [1], [1], [2], [0, 0, 0, 1, 1, 2], [0], [0]>} : vector<4x16x16xf32>, vector<4x16x16xf32>, vector<4x16x16xf32> -> vector<4x16x16xf32>
    "tpu.trace_stop"() : () -> ()
    %c12 = arith.constant 12 : index
    %c0_16 = arith.constant 0 : index
    %c0_17 = arith.constant 0 : index
    %17 = vector.load %arg6[%c12, %c0_16, %c0_17] : memref<28x16x16xf32, #tpu.memory_space<vmem>>, vector<4x16x16xf32>
    tpu.vector_store %arg6[%c12, %c0_16, %c0_17], %16 {strides = array<i32>} : memref<28x16x16xf32, #tpu.memory_space<vmem>>, vector<4x16x16xf32>,
    "tpu.trace_start"() <{level = 10 : i32, message = "cwv,cvm->cwm"}> : () -> ()
    %cst_18 = arith.constant dense<0.000000e+00> : vector<4x16x16xf32>
    %18 = tpu.matmul %15, %16, %cst_18 {dimension_numbers = #tpu.dot_dimension_numbers<[2], [1], [1], [2], [0, 0, 0, 1, 1, 2], [0], [0]>} : vector<4x16x16xf32>, vector<4x16x16xf32>, vector<4x16x16xf32> -> vector<4x16x16xf32>
    "tpu.trace_stop"() : () -> ()
    %c16 = arith.constant 16 : index
    %c0_19 = arith.constant 0 : index
    %c0_20 = arith.constant 0 : index
    %19 = vector.load %arg6[%c16, %c0_19, %c0_20] : memref<28x16x16xf32, #tpu.memory_space<vmem>>, vector<4x16x16xf32>
    tpu.vector_store %arg6[%c16, %c0_19, %c0_20], %18 {strides = array<i32>} : memref<28x16x16xf32, #tpu.memory_space<vmem>>, vector<4x16x16xf32>,
    %c2 = arith.constant 2 : index
    %c0_21 = arith.constant 0 : index
    %c0_22 = arith.constant 0 : index
    %20 = vector.load %arg2[%c2, %c0_21, %c0_22] : memref<3x16x16xf32, #tpu.memory_space<vmem>>, vector<1x16x16xf32>
    %21 = vector.shape_cast %20 : vector<1x16x16xf32> to vector<16x16xf32>
    %22 = vector.shape_cast %21 : vector<16x16xf32> to vector<1x16x16xf32>
    %23 = vector.shape_cast %22 : vector<1x16x16xf32> to vector<1x16x16xf32>
    %24 = vector.broadcast %23 : vector<1x16x16xf32> to vector<4x16x16xf32>
    "tpu.trace_start"() <{level = 10 : i32, message = "cwv,cvm->cwm"}> : () -> ()
    %cst_23 = arith.constant dense<0.000000e+00> : vector<4x16x16xf32>
    %25 = tpu.matmul %24, %0, %cst_23 {dimension_numbers = #tpu.dot_dimension_numbers<[2], [1], [1], [2], [0, 0, 0, 1, 1, 2], [0], [0]>} : vector<4x16x16xf32>, vector<4x16x16xf32>, vector<4x16x16xf32> -> vector<4x16x16xf32>
    "tpu.trace_stop"() : () -> ()
    %c20 = arith.constant 20 : index
    %c0_24 = arith.constant 0 : index
    %c0_25 = arith.constant 0 : index
    %26 = vector.load %arg6[%c20, %c0_24, %c0_25] : memref<28x16x16xf32, #tpu.memory_space<vmem>>, vector<4x16x16xf32>
    tpu.vector_store %arg6[%c20, %c0_24, %c0_25], %25 {strides = array<i32>} : memref<28x16x16xf32, #tpu.memory_space<vmem>>, vector<4x16x16xf32>,
    "tpu.trace_start"() <{level = 10 : i32, message = "cwv,cvm->cwm"}> : () -> ()
    %cst_26 = arith.constant dense<0.000000e+00> : vector<4x16x16xf32>
    %27 = tpu.matmul %24, %25, %cst_26 {dimension_numbers = #tpu.dot_dimension_numbers<[2], [1], [1], [2], [0, 0, 0, 1, 1, 2], [0], [0]>} : vector<4x16x16xf32>, vector<4x16x16xf32>, vector<4x16x16xf32> -> vector<4x16x16xf32>
    "tpu.trace_stop"() : () -> ()
    %c24 = arith.constant 24 : index
    %c0_27 = arith.constant 0 : index
    %c0_28 = arith.constant 0 : index
    %28 = vector.load %arg6[%c24, %c0_27, %c0_28] : memref<28x16x16xf32, #tpu.memory_space<vmem>>, vector<4x16x16xf32>
    tpu.vector_store %arg6[%c24, %c0_27, %c0_28], %27 {strides = array<i32>} : memref<28x16x16xf32, #tpu.memory_space<vmem>>, vector<4x16x16xf32>,
    %c0_29 = arith.constant 0 : index
    %c0_30 = arith.constant 0 : index
    %c0_31 = arith.constant 0 : index
    %29 = vector.load %arg6[%c0_29, %c0_30, %c0_31] : memref<28x16x16xf32, #tpu.memory_space<vmem>>, vector<28x16x16xf32>
    %30 = vector.shape_cast %29 : vector<28x16x16xf32> to vector<28x256xf32>
    %c0_32 = arith.constant 0 : index
    %c0_33 = arith.constant 0 : index
    %31 = vector.load %arg3[%c0_32, %c0_33] : memref<8x28xf32, #tpu.memory_space<vmem>>, vector<8x28xf32>
    %cst_34 = arith.constant dense<0.000000e+00> : vector<8x256xf32>
    %32 = tpu.matmul %31, %30, %cst_34 {dimension_numbers = #tpu.dot_dimension_numbers<[1], [0], [0], [1], [0, 0, 1, 1], [], []>} : vector<8x28xf32>, vector<28x256xf32>, vector<8x256xf32> -> vector<8x256xf32>
    %c0_35 = arith.constant 0 : index
    %c0_36 = arith.constant 0 : index
    %33 = vector.load %arg4[%c0_35, %c0_36] : memref<8x1xf32, #tpu.memory_space<vmem>>, vector<8x1xf32>
    %34 = vector.broadcast %33 : vector<8x1xf32> to vector<8x256xf32>
    %35 = arith.addf %32, %34 : vector<8x256xf32>
    %c0_37 = arith.constant 0 : index
    %c0_38 = arith.constant 0 : index
    %c0_39 = arith.constant 0 : index
    %36 = vector.load %arg5[%c0_37, %c0_38, %c0_39] : memref<1x8x256xf32, #tpu.memory_space<vmem>>, vector<1x8x256xf32>
    %37 = vector.shape_cast %36 : vector<1x8x256xf32> to vector<8x256xf32>
    %38 = vector.shape_cast %35 : vector<8x256xf32> to vector<1x8x256xf32>
    tpu.vector_store %arg5[%c0_37, %c0_38, %c0_39], %38 {strides = array<i32>} : memref<1x8x256xf32, #tpu.memory_space<vmem>>, vector<1x8x256xf32>,
    return
  }
  func.func @transform_0(%arg0: i32) -> (i32, i32, i32) {
    %c0_i32 = arith.constant 0 : i32
    %c0_i32_0 = arith.constant 0 : i32
    %c0_i32_1 = arith.constant 0 : i32
    return %c0_i32, %c0_i32_0, %arg0 : i32, i32, i32
  }
  func.func @transform_1(%arg0: i32) -> (i32, i32, i32) {
    %c0_i32 = arith.constant 0 : i32
    %c0_i32_0 = arith.constant 0 : i32
    %c0_i32_1 = arith.constant 0 : i32
    %c0_i32_2 = arith.constant 0 : i32
    return %c0_i32, %c0_i32_0, %c0_i32_1 : i32, i32, i32
  }
  func.func @transform_2(%arg0: i32) -> (i32, i32) {
    %c0_i32 = arith.constant 0 : i32
    %c0_i32_0 = arith.constant 0 : i32
    %c0_i32_1 = arith.constant 0 : i32
    return %c0_i32, %c0_i32_0 : i32, i32
  }
  func.func @transform_3(%arg0: i32) -> (i32, i32) {
    %c0_i32 = arith.constant 0 : i32
    %c0_i32_0 = arith.constant 0 : i32
    %c0_i32_1 = arith.constant 0 : i32
    return %c0_i32, %c0_i32_0 : i32, i32
  }
  func.func @transform_4(%arg0: i32) -> (i32, i32, i32) {
    %c0_i32 = arith.constant 0 : i32
    %c0_i32_0 = arith.constant 0 : i32
    %c0_i32_1 = arith.constant 0 : i32
    return %arg0, %c0_i32, %c0_i32_0 : i32, i32, i32
  }
}

</mosaic_0001>

<bundles_post_ra>
// kernel: gcn_forward.1
= control target key start
LH: loop header
LB: loop body
LE: loop exit
PB: predicated region body
PF: predicated region fallthrough
CT: control target
= control target key end

     0   :  { %vm25_vm0 = vcmask 130048   ;;  %v3634_v10 = vmov 1983009808   ;;  %v1975_v12 = vlaneseq  ;;  %v3635_v38 = vmov 1934713408   ;;  %s3636_s12 = smov 16   ;;  %s4406_s0 = inlined_call_operand.vmem [shape: f32[4,16,16], index: 0, kind: input, shape index: {}]   ;;  %s4407_s1 = inlined_call_operand.vmem [shape: f32[3,16,16], index: 1, kind: input, shape index: {}]   ;;  %s4408_s3 = inlined_call_operand.vmem [shape: f32[8,1], index: 3, kind: input, shape index: {}]   ;;  %s4409_s2 = inlined_call_operand.vmem [shape: f32[8,28], index: 2, kind: input, shape index: {}]   ;;  %s4410_s4 = inlined_call_operand.vmem [shape: f32[1,8,256], index: 4, kind: output, shape index: {}]  }
   0x1   :  { %v3673_v0 = vld [vmem:[%s4406_s0 + $0x8] sm:$0xff]  ;;  %v3683_v2 = vld [vmem:[%s4406_s0] sm:$0xff]  ;;  %v3710_v5 = vld [vmem:[%s4406_s0 + $0x18] sm:$0xff]  ;;  %v1973_v11 = vunpack.c.l.s4 %v3634_v10  ;;  %v2037_v39 = vunpack.c.l.s4 %v3635_v38  ;;  %s3637_s13 = smov 32   ;;  %s3638_s14 = smov 48   ;;  %vm3150_vm1 = vcmask 261120  }
   0x2   :  { %v3678_v1 = vld [vmem:[%s4406_s0 + $0x28] sm:$0xff]  ;;  %27 = vst.msk [vmem:[#allocation2 + $0x8] sm:$0xff] %vm25_vm0, %v3673_v0  ;;  %3454 = vmatprep.subr.mxu1 %v3673_v0  ;;  %26 = vst.msk [vmem:[#allocation2] sm:$0xff] %vm25_vm0, %v3683_v2  ;;  %v3696_v3 = vld [vmem:[%s4406_s0 + $0x20] sm:$0xff]  ;;  %v3772_v18 = vshrl.u32 %v1975_v12, 7  ;;  %s3639_s15 = smov 64  }
   0x3   :  { %31 = vst.msk [vmem:[#allocation2 + $0x28] sm:$0xff] %vm25_vm0, %v3678_v1  ;;  %3468 = vmatprep.subr.mxu0 %v3678_v1  ;;  %v3701_v4 = vld [vmem:[%s4407_s1] sm:$0xff]  ;;  %3455 = vmatpush3.msra.mxu1 %v3673_v0  ;;  %30 = vst.msk [vmem:[#allocation2 + $0x20] sm:$0xff] %vm25_vm0, %v3696_v3  ;;  %v3715_v6 = vld [vmem:[%s4406_s0 + $0x10] sm:$0xff]  ;;  %v1974_v17 = vunpack.c.0.s8 %v1973_v11  ;;  %v2038_v46 = vunpack.c.0.s8 %v2037_v39  ;;  %s3640_s16 = smov 80   ;;  %vm3155_vm2 = vcmask 392192  }
   0x4   :  { %3469 = vmatpush3.msra.mxu0 %v3678_v1  ;;  %v3720_v7 = vld [vmem:[%s4406_s0 + $0x38] sm:$0xff]  ;;  %3456 = vmatprep.subr.mxu1 %v3683_v2  ;;  %v3727_v8 = vld [vmem:[%s4407_s1 + $0x8] sm:$0xff]  ;;  %29 = vst.msk [vmem:[#allocation2 + $0x18] sm:$0xff] %vm25_vm0, %v3710_v5  ;;  %28 = vst.msk [vmem:[#allocation2 + $0x10] sm:$0xff] %vm25_vm0, %v3715_v6  ;;  %vm3160_vm3 = vcmask 523264   ;;  %vm3165_vm4 = vcmask 654336  }
   0x5   :  { %3470 = vmatprep.subr.mxu0 %v3696_v3  ;;  %33 = vst.msk [vmem:[#allocation2 + $0x38] sm:$0xff] %vm25_vm0, %v3720_v7  ;;  %v3738_v9 = vld [vmem:[%s4406_s0 + $0x30] sm:$0xff]  ;;  %3457 = vmatpush3.msra.mxu1 %v3683_v2  ;;  %v3775_v25 = vsub.s32 %v1974_v17, %v3772_v18  ;;  %v3819_v55 = vsub.s32 %v2038_v46, %v3772_v18  ;;  %v3831_v59 = vld [vmem:[%s4407_s1 + $0x18] sm:$0xff]  ;;  %s3642_s21 = smov 112   ;;  %vm3170_vm5 = vcmask 785408   ;;  %vm3175_vm6 = vcmask 916480  }
   0x6   :  { %3458 = vmatprep.mubr.msk.f32.mxu1 %vm25_vm0, %v3701_v4  ;;  %32 = vst.msk [vmem:[#allocation2 + $0x30] sm:$0xff] %vm25_vm0, %v3738_v9  ;;  %3471 = vmatpush3.msra.mxu0 %v3696_v3  ;;  %v3825_v58 = vld [vmem:[%s4407_s1 + $0x10] sm:$0xff]  ;;  %vm3219_vm7 = vcmask 1043456   ;;  %vm3215_vm8 = vcmask 228352  }
   0x7   :  { %3472 = vmatprep.mubr.msk.f32.mxu0 %vm25_vm0, %v3701_v4  ;;  %3459 = vmatmul.mubr.msk.f32.vlgmr.msra.gmra.mxu1 %vm25_vm0, %v3727_v8 }
   0x8   :  { %3461 = vmatprep.subr.mxu1 %v3710_v5  ;;  %3473 = vmatmul.mubr.msk.f32.vlgmr.msra.gmra.mxu0 %vm25_vm0, %v3727_v8 }
   0x9   :  { %3462 = vmatpush3.msra.mxu1 %v3710_v5  ;;  %3465 = vmatprep.mubr.msk.f32.mxu1 %vm25_vm0, %v3701_v4  ;;  %v1915_v13 = vld [vmem:[#allocation2 + $0x8] sm:$0xff]  ;;  %v1914_v19 = vld [vmem:[#allocation2] sm:$0xff] }
   0xa   :  { %3463 = vmatprep.subr.mxu1 %v3715_v6  ;;  %3486 = vmatprep.mubr.msk.f32.mxu0 %vm25_vm0, %v3701_v4  ;;  %v1919_v15 = vld [vmem:[#allocation2 + $0x28] sm:$0xff]  ;;  %v1918_v21 = vld [vmem:[#allocation2 + $0x20] sm:$0xff] }
   0xb   :  { %3464 = vmatpush3.msra.mxu1 %v3715_v6  ;;  %v1917_v14 = vld [vmem:[#allocation2 + $0x18] sm:$0xff]  ;;  %v1916_v20 = vld [vmem:[#allocation2 + $0x10] sm:$0xff]  ;;  %v2447_v23 = vcombine.high %v1915_v13, %v1919_v15  ;;  %v1971_v26 = vcombine.high %v1914_v19, %v1918_v21  ;;  %v2446_v40 = vcombine.low %v1915_v13, %v1919_v15  ;;  %v1970_v44 = vcombine.low %v1914_v19, %v1918_v21 }
   0xc   :  { %3466 = vmatmul.mubr.msk.f32.vlgmr.msra.gmra.mxu1 %vm25_vm0, %v3727_v8  ;;  %3475 = vmatprep.subr.mxu1 %v3720_v7  ;;  %v1921_v16 = vld [vmem:[#allocation2 + $0x38] sm:$0xff] }
   0xd   :  { %3476 = vmatpush3.msra.mxu1 %v3720_v7  ;;  %3479 = vmatprep.mubr.msk.f32.mxu1 %vm25_vm0, %v3701_v4  ;;  %v1920_v22 = vld [vmem:[#allocation2 + $0x30] sm:$0xff]  ;;  %v2463_v24 = vcombine.high %v1917_v14, %v1921_v16  ;;  %v3778_v28 = vrot.slane %v2447_v23, %v3775_v25  ;;  %v3784_v30 = vrot.slane %v1971_v26, %v3775_v25 }
   0xe   :  { %3477 = vmatprep.subr.mxu1 %v3738_v9  ;;  %v1987_v27 = vcombine.high %v1916_v20, %v1920_v22  ;;  %v2462_v41 = vcombine.low %v1917_v14, %v1921_v16  ;;  %v1986_v45 = vcombine.low %v1916_v20, %v1920_v22  ;;  %v2454_v47 = vrot.slane %v2446_v40, %v3775_v25 }
   0xf   :  { %3478 = vmatpush3.msra.mxu1 %v3738_v9  ;;  %v3781_v29 = vrot.slane %v2463_v24, %v3775_v25  ;;  %v3811_v51 = vrot.slane %v1970_v44, %v3775_v25 }
  0x10   :  { %3480 = vmatmul.mubr.msk.f32.vlgmr.msra.gmra.mxu1 %vm25_vm0, %v3727_v8  ;;  %v3787_v31 = vrot.slane %v1987_v27, %v3775_v25  ;;  %v2470_v48 = vrot.slane %v2462_v41, %v3775_v25  ;;  %v3814_v52 = vrot.slane %v1986_v45, %v3775_v25 }
  0x11   :  { %3493 = vmatprep.mubr.msk.f32.mxu1 %vm25_vm0, %v3701_v4  ;;  %v2527_v32 = vcombine.high %v3778_v28, %v3781_v29 }
  0x12   :  { %v2051_v33 = vcombine.high %v3784_v30, %v3787_v31  ;;  %v2510_v56 = vcombine.low %v2454_v47, %v2470_v48  ;;  %v2511_v57 = vcombine.high %v2454_v47, %v2470_v48  ;;  %v2035_v63 = vcombine.high %v3811_v51, %v3814_v52 }
  0x13   :  { %v2034_v15 = vcombine.low %v3811_v51, %v3814_v52  ;;  %v2050_v18 = vcombine.low %v3784_v30, %v3787_v31 }
  0x14   :  { %v3841_v10 = vrot.slane %v2510_v56, %v3819_v55  ;;  %v3844_v11 = vrot.slane %v2511_v57, %v3819_v55  ;;  %v3860_v22 = vrot.slane %v2035_v63, %v3819_v55  ;;  %v2526_v63 = vcombine.low %v3778_v28, %v3781_v29 }
  0x15   :  { %v3886_v44 = vrot.slane %v2034_v15, %v3819_v55  ;;  %v3890_v46 = vrot.slane %v2050_v18, %v3819_v55 }
  0xc7   :  { %v3460_v34 = vpop.f32.mrf.mxu1 }
  0xc8   :  { %344 = vst.msk [vmem:[#allocation2 + $0x48] sm:$0xff] %vm25_vm0, %v3460_v34  ;;  %v3474_v35 = vpop.f32.mrf.mxu0  ;;  %3482 = vmatprep.subr.mxu0 %v3460_v34 }
  0xc9   :  { %348 = vst.msk [vmem:[#allocation2 + $0x68] sm:$0xff] %vm25_vm0, %v3474_v35  ;;  %v108_v36 = vpop.f32.mrf.mxu1  ;;  %3483 = vmatpush3.msra.mxu0 %v3460_v34 }
  0xca   :  { %343 = vst.msk [vmem:[#allocation2 + $0x40] sm:$0xff] %vm25_vm0, %v108_v36  ;;  %v258_v37 = vpop.f32.mrf.mxu0  ;;  %3484 = vmatprep.subr.mxu0 %v108_v36 }
  0xcb   :  { %347 = vst.msk [vmem:[#allocation2 + $0x60] sm:$0xff] %vm25_vm0, %v258_v37  ;;  %3485 = vmatpush3.msra.mxu0 %v108_v36 }
  0xcc   :  { %v3467_v42 = vpop.f32.mrf.mxu1  ;;  %3487 = vmatmul.mubr.msk.f32.vlgmr.msra.gmra.mxu0 %vm25_vm0, %v3727_v8  ;;  %3496 = vmatprep.subr.mxu0 %v3474_v35 }
  0xcd   :  { %346 = vst.msk [vmem:[#allocation2 + $0x58] sm:$0xff] %vm25_vm0, %v3467_v42  ;;  %3489 = vmatprep.subr.mxu1 %v3467_v42  ;;  %3497 = vmatpush3.msra.mxu0 %v3474_v35 }
  0xce   :  { %v183_v43 = vpop.f32.mrf.mxu1  ;;  %3490 = vmatpush3.msra.mxu1 %v3467_v42  ;;  %3498 = vmatprep.subr.mxu0 %v258_v37 }
  0xcf   :  { %345 = vst.msk [vmem:[#allocation2 + $0x50] sm:$0xff] %vm25_vm0, %v183_v43  ;;  %3491 = vmatprep.subr.mxu1 %v183_v43  ;;  %3499 = vmatpush3.msra.mxu0 %v258_v37  ;;  %v1923_v53 = vld [vmem:[#allocation2 + $0x48] sm:$0xff] }
  0xd0   :  { %v3481_v49 = vpop.f32.mrf.mxu1  ;;  %3492 = vmatpush3.msra.mxu1 %v183_v43  ;;  %3500 = vmatprep.mubr.msk.f32.mxu0 %vm25_vm0, %v3701_v4  ;;  %v1927_v54 = vld [vmem:[#allocation2 + $0x68] sm:$0xff] }
  0xd1   :  { %350 = vst.msk [vmem:[#allocation2 + $0x78] sm:$0xff] %vm25_vm0, %v3481_v49  ;;  %3494 = vmatmul.mubr.msk.f32.vlgmr.msra.gmra.mxu1 %vm25_vm0, %v3727_v8  ;;  %3501 = vmatmul.mubr.msk.f32.vlgmr.msra.gmra.mxu0 %vm25_vm0, %v3727_v8  ;;  %v1922_v60 = vld [vmem:[#allocation2 + $0x40] sm:$0xff]  ;;  %v2478_v62 = vcombine.low %v1923_v53, %v1927_v54  ;;  %v2479_v13 = vcombine.high %v1923_v53, %v1927_v54 }
  0xd2   :  { %v333_v50 = vpop.f32.mrf.mxu1  ;;  %3503 = vmatprep.subr.mxu1 %v3481_v49  ;;  %3510 = vmatprep.subr.mxu0 %v3673_v0  ;;  %v1926_v61 = vld [vmem:[#allocation2 + $0x60] sm:$0xff]  ;;  %v3905_v53 = vrot.slane %v2527_v32, %v3819_v55  ;;  %v3924_v32 = vrot.slane %v2051_v33, %v3819_v55 }
  0xd3   :  { %349 = vst.msk [vmem:[#allocation2 + $0x70] sm:$0xff] %vm25_vm0, %v333_v50  ;;  %3504 = vmatpush3.msra.mxu1 %v3481_v49  ;;  %3511 = vmatpush3.msra.mxu0 %v3673_v0  ;;  %v2002_v14 = vcombine.low %v1922_v60, %v1926_v61  ;;  %v2003_v21 = vcombine.high %v1922_v60, %v1926_v61 }
  0xd4   :  { %3505 = vmatprep.subr.mxu1 %v333_v50  ;;  %3512 = vmatprep.subr.mxu0 %v3683_v2  ;;  %v2493_v34 = vrot.slane %v2479_v13, %v3775_v25 }
  0xd5   :  { %3506 = vmatpush3.msra.mxu1 %v333_v50  ;;  %3507 = vmatprep.mubr.msk.f32.mxu1 %vm25_vm0, %v3701_v4  ;;  %v1925_v4 = vld [vmem:[#allocation2 + $0x58] sm:$0xff]  ;;  %v2010_v27 = vrot.slane %v2002_v14, %v3775_v25  ;;  %v2017_v39 = vrot.slane %v2003_v21, %v3775_v25  ;;  %v2534_v14 = vrot.slane %v2526_v63, %v3819_v55 }
  0xd6   :  { %3513 = vmatpush3.msra.mxu0 %v3683_v2  ;;  %3514 = vmatprep.mubr.msk.f32.mxu0 %vm25_vm0, %v3825_v58  ;;  %v1924_v19 = vld [vmem:[#allocation2 + $0x50] sm:$0xff] }
  0xd7   :  { %3508 = vmatmul.mubr.msk.f32.vlgmr.msra.gmra.mxu1 %vm25_vm0, %v3727_v8  ;;  %3515 = vmatmul.mubr.msk.f32.vlgmr.msra.gmra.mxu0 %vm25_vm0, %v3831_v59  ;;  %v2486_v8 = vrot.slane %v2478_v62, %v3775_v25 }
  0xd8   :  { %v1929_v12 = vld [vmem:[#allocation2 + $0x78] sm:$0xff]  ;;  %3517 = vmatprep.subr.mxu1 %v3710_v5  ;;  %3524 = vmatprep.subr.mxu0 %v3678_v1 }
  0xd9   :  { %v2494_v16 = vcombine.low %v1925_v4, %v1929_v12  ;;  %v2495_v17 = vcombine.high %v1925_v4, %v1929_v12  ;;  %3518 = vmatpush3.msra.mxu1 %v3710_v5  ;;  %3525 = vmatpush3.msra.mxu0 %v3678_v1 }
  0xda   :  { %v1928_v20 = vld [vmem:[#allocation2 + $0x70] sm:$0xff]  ;;  %3519 = vmatprep.subr.mxu1 %v3715_v6  ;;  %3526 = vmatprep.subr.mxu0 %v3696_v3 }
  0xdb   :  { %v2502_v23 = vrot.slane %v2494_v16, %v3775_v25  ;;  %v2018_v24 = vcombine.low %v1924_v19, %v1928_v20  ;;  %v2019_v26 = vcombine.high %v1924_v19, %v1928_v20  ;;  %3520 = vmatpush3.msra.mxu1 %v3715_v6  ;;  %3521 = vmatprep.mubr.msk.f32.mxu1 %vm25_vm0, %v3825_v58 }
  0xdc   :  { %v2509_v35 = vrot.slane %v2495_v17, %v3775_v25  ;;  %3527 = vmatpush3.msra.mxu0 %v3696_v3  ;;  %3528 = vmatprep.mubr.msk.f32.mxu0 %vm25_vm0, %v3825_v58 }
  0xdd   :  { %v2542_v36 = vcombine.low %v2486_v8, %v2502_v23  ;;  %v2026_v37 = vrot.slane %v2018_v24, %v3775_v25  ;;  %v2543_v38 = vcombine.high %v2486_v8, %v2502_v23  ;;  %3522 = vmatmul.mubr.msk.f32.vlgmr.msra.gmra.mxu1 %vm25_vm0, %v3831_v59  ;;  %3529 = vmatmul.mubr.msk.f32.vlgmr.msra.gmra.mxu0 %vm25_vm0, %v3831_v59 }
  0xde   :  { %v2033_v40 = vrot.slane %v2019_v26, %v3775_v25  ;;  %v2559_v41 = vcombine.high %v2493_v34, %v2509_v35  ;;  %3531 = vmatprep.subr.mxu1 %v3720_v7  ;;  %3535 = vmatprep.mubr.msk.f32.mxu1 %vm25_vm0, %v3825_v58 }
  0xdf   :  { %v2550_v42 = vrot.slane %v2542_v36, %v3819_v55  ;;  %v2067_v43 = vcombine.high %v2010_v27, %v2026_v37  ;;  %3532 = vmatpush3.msra.mxu1 %v3720_v7  ;;  %v2066_v45 = vcombine.low %v2010_v27, %v2026_v37  ;;  %3542 = vmatprep.mubr.msk.f32.mxu0 %vm25_vm0, %v3825_v58 }
  0xe0   :  { %v2082_v47 = vcombine.low %v2017_v39, %v2033_v40  ;;  %3533 = vmatprep.subr.mxu1 %v3738_v9  ;;  %v2557_v51 = vrot.slane %v2543_v38, %v3819_v55  ;;  %v3918_v60 = vrot.slane %v2559_v41, %v3819_v55  ;;  %v2083_v61 = vcombine.high %v2017_v39, %v2033_v40 }
  0xe1   :  { %v2575_v48 = vcombine.high %v3841_v10, %v2550_v42  ;;  %v2574_v49 = vcombine.low %v3841_v10, %v2550_v42  ;;  %v2081_v50 = vrot.slane %v2067_v43, %v3819_v55  ;;  %3534 = vmatpush3.msra.mxu1 %v3738_v9  ;;  %v2074_v52 = vrot.slane %v2066_v45, %v3819_v55 }
  0xe2   :  { %3536 = vmatmul.mubr.msk.f32.vlgmr.msra.gmra.mxu1 %vm25_vm0, %v3831_v59  ;;  %v3912_v56 = vrot.slane %v2082_v47, %v3819_v55  ;;  %v2576_v62 = vcombine.low %v3844_v11, %v2557_v51  ;;  %v2558_v10 = vcombine.low %v2493_v34, %v2509_v35  ;;  %v2580_v12 = vcombine.low %v3905_v53, %v3918_v60 }
  0xe3   :  { %3038 = vrot.lane.b32.xlu0 %v2575_v48, %s3636_s12  ;;  %v2100_v54 = vcombine.low %v3860_v22, %v2081_v50  ;;  %v2098_v57 = vcombine.low %v3886_v44, %v2074_v52  ;;  %3549 = vmatprep.mubr.msk.f32.mxu1 %vm25_vm0, %v3825_v58  ;;  %v2581_v30 = vcombine.high %v3905_v53, %v3918_v60  ;;  %v3209_v53 = vld [vmem:[%s4408_s3] sm:$0xff] }
  0xe4   :  { %v2103_v4 = vcombine.high %v3890_v46, %v3912_v56  ;;  %v3937_v31 = vrot.slane %v2083_v61, %v3819_v55  ;;  %v2101_v33 = vcombine.high %v3860_v22, %v2081_v50  ;;  %v2577_v13 = vcombine.high %v3844_v11, %v2557_v51 }
  0xe5   :  { %2942 = vrot.lane.b32.xlu1 %v2100_v54, %s3637_s13  ;;  %v2566_v15 = vrot.slane %v2558_v10, %v3819_v55  ;;  %v2099_v18 = vcombine.high %v3886_v44, %v2074_v52  ;;  %v2102_v11 = vcombine.low %v3890_v46, %v3912_v56 }
  0xe6   :  { %v2104_v28 = vcombine.low %v3924_v32, %v3937_v31  ;;  %v2105_v29 = vcombine.high %v3924_v32, %v3937_v31 }
  0xe7   :  { %3054 = vrot.lane.b32.xlu0 %v2576_v62, %s3637_s13  ;;  %v2578_v16 = vcombine.low %v2534_v14, %v2566_v15  ;;  %v2579_v17 = vcombine.high %v2534_v14, %v2566_v15 }
  0xe9   :  { %2958 = vrot.lane.b32.xlu1 %v2101_v33, %s3638_s14 }
  0xeb   :  { %3070 = vrot.lane.b32.xlu0 %v2577_v13, %s3638_s14 }
  0xef   :  { %3086 = vrot.lane.b32.xlu0 %v2578_v16, %s3639_s15 }
  0xf3   :  { %3102 = vrot.lane.b32.xlu0 %v2579_v17, %s3640_s16 }
  0xf7   :  { %2926 = vrot.lane.b32.xlu0 %v2099_v18, %s3636_s12 }
  0xfb   :  { %2974 = vrot.lane.b32.xlu0 %v2102_v11, %s3639_s15  ;;  %v3998_v11 = vld [vmem:[%s4407_s1 + $0x20] sm:$0xff] }
 0x155   :  { %v3039_v8 = vpop.permute.xlu0 %3038 }
 0x156   :  { %v3180_v19 = vsel %vm25_vm0, %v2574_v49, %v3039_v8 }
 0x157   :  { %v2943_v36 = vpop.permute.xlu1 %2942 }
 0x159   :  { %v3055_v20 = vpop.permute.xlu0 %3054 }
 0x15a   :  { %v3184_v21 = vsel %vm3150_vm1, %v3180_v19, %v3055_v20 }
 0x15d   :  { %v3071_v22 = vpop.permute.xlu0 %3070 }
 0x15e   :  { %v3188_v23 = vsel %vm3155_vm2, %v3184_v21, %v3071_v22  ;;  %v4005_v21 = vld [vmem:[%s4407_s1 + $0x28] sm:$0xff]  ;;  %s3641_s1 = smov 96  }
 0x161   :  { %v3087_v24 = vpop.permute.xlu0 %3086 }
 0x162   :  { %v3192_v26 = vsel %vm3160_vm3, %v3188_v23, %v3087_v24 }
 0x165   :  { %v3103_v27 = vpop.permute.xlu0 %3102 }
 0x166   :  { %v3962_v34 = vsel %vm3165_vm4, %v3192_v26, %v3103_v27 }
 0x169   :  { %v2927_v35 = vpop.permute.xlu0 %2926 }
 0x16a   :  { %v3146_v37 = vsel %vm25_vm0, %v2098_v57, %v2927_v35 }
 0x16b   :  { %v3966_v38 = vsel %vm3150_vm1, %v3146_v37, %v2943_v36 }
 0x18c   :  { %v3488_v39 = vpop.f32.mrf.mxu0 }
 0x18d   :  { %653 = vst.msk [vmem:[#allocation2 + $0x88] sm:$0xff] %vm25_vm0, %v3488_v39 }
 0x18e   :  { %v417_v40 = vpop.f32.mrf.mxu0 }
 0x18f   :  { %652 = vst.msk [vmem:[#allocation2 + $0x80] sm:$0xff] %vm25_vm0, %v417_v40 }
 0x191   :  { %v3495_v41 = vpop.f32.mrf.mxu1  ;;  %v3502_v42 = vpop.f32.mrf.mxu0 }
 0x192   :  { %655 = vst.msk [vmem:[#allocation2 + $0x98] sm:$0xff] %vm25_vm0, %v3495_v41  ;;  %657 = vst.msk [vmem:[#allocation2 + $0xa8] sm:$0xff] %vm25_vm0, %v3502_v42 }
 0x193   :  { %v492_v43 = vpop.f32.mrf.mxu1  ;;  %v567_v44 = vpop.f32.mrf.mxu0 }
 0x194   :  { %654 = vst.msk [vmem:[#allocation2 + $0x90] sm:$0xff] %vm25_vm0, %v492_v43  ;;  %656 = vst.msk [vmem:[#allocation2 + $0xa0] sm:$0xff] %vm25_vm0, %v567_v44  ;;  %v1931_v61 = vld [vmem:[#allocation2 + $0x88] sm:$0xff] }
 0x196   :  { %v1930_v16 = vld [vmem:[#allocation2 + $0x80] sm:$0xff] }
 0x197   :  { %v3509_v45 = vpop.f32.mrf.mxu1  ;;  %v3516_v47 = vpop.f32.mrf.mxu0 }
 0x198   :  { %659 = vst.msk [vmem:[#allocation2 + $0xb8] sm:$0xff] %vm25_vm0, %v3509_v45  ;;  %971 = vst.msk [vmem:[#allocation2 + $0xc8] sm:$0xff] %vm25_vm0, %v3516_v47  ;;  %3538 = vmatprep.subr.mxu0 %v3516_v47 }
 0x199   :  { %v642_v48 = vpop.f32.mrf.mxu1  ;;  %v735_v49 = vpop.f32.mrf.mxu0  ;;  %3539 = vmatpush3.msra.mxu0 %v3516_v47  ;;  %v1933_v62 = vld [vmem:[#allocation2 + $0x98] sm:$0xff]  ;;  %v1935_v63 = vld [vmem:[#allocation2 + $0xa8] sm:$0xff] }
 0x19a   :  { %658 = vst.msk [vmem:[#allocation2 + $0xb0] sm:$0xff] %vm25_vm0, %v642_v48  ;;  %970 = vst.msk [vmem:[#allocation2 + $0xc0] sm:$0xff] %vm25_vm0, %v735_v49  ;;  %3540 = vmatprep.subr.mxu0 %v735_v49  ;;  %v2582_v15 = vcombine.low %v1931_v61, %v1935_v63  ;;  %v2583_v19 = vcombine.high %v1931_v61, %v1935_v63 }
 0x19b   :  { %3541 = vmatpush3.msra.mxu0 %v735_v49  ;;  %v1934_v33 = vld [vmem:[#allocation2 + $0xa0] sm:$0xff]  ;;  %v1932_v23 = vld [vmem:[#allocation2 + $0x90] sm:$0xff] }
 0x19c   :  { %3543 = vmatmul.mubr.msk.f32.vlgmr.msra.gmra.mxu0 %vm25_vm0, %v3831_v59  ;;  %v2107_v20 = vcombine.high %v1930_v16, %v1934_v33  ;;  %v2106_v24 = vcombine.low %v1930_v16, %v1934_v33  ;;  %v2590_v35 = vrot.slane %v2582_v15, %v3775_v25 }
 0x19d   :  { %v3523_v50 = vpop.f32.mrf.mxu1  ;;  %v3530_v51 = vpop.f32.mrf.mxu0  ;;  %3556 = vmatprep.mubr.msk.f32.mxu0 %vm25_vm0, %v3825_v58 }
 0x19e   :  { %973 = vst.msk [vmem:[#allocation2 + $0xd8] sm:$0xff] %vm25_vm0, %v3523_v50  ;;  %975 = vst.msk [vmem:[#allocation2 + $0xe8] sm:$0xff] %vm25_vm0, %v3530_v51  ;;  %3545 = vmatprep.subr.mxu1 %v3523_v50  ;;  %3552 = vmatprep.subr.mxu0 %v3530_v51  ;;  %v4028_v39 = vrot.slane %v2107_v20, %v3775_v25  ;;  %v4034_v41 = vrot.slane %v2106_v24, %v3775_v25 }
 0x19f   :  { %v810_v52 = vpop.f32.mrf.mxu1  ;;  %v885_v54 = vpop.f32.mrf.mxu0  ;;  %3546 = vmatpush3.msra.mxu1 %v3523_v50  ;;  %3553 = vmatpush3.msra.mxu0 %v3530_v51  ;;  %v1937_v57 = vld [vmem:[#allocation2 + $0xb8] sm:$0xff]  ;;  %v1939_v8 = vld [vmem:[#allocation2 + $0xc8] sm:$0xff] }
 0x1a0   :  { %972 = vst.msk [vmem:[#allocation2 + $0xd0] sm:$0xff] %vm25_vm0, %v810_v52  ;;  %974 = vst.msk [vmem:[#allocation2 + $0xe0] sm:$0xff] %vm25_vm0, %v885_v54  ;;  %3547 = vmatprep.subr.mxu1 %v810_v52  ;;  %3554 = vmatprep.subr.mxu0 %v885_v54  ;;  %v2598_v10 = vcombine.low %v1933_v62, %v1937_v57  ;;  %v2599_v14 = vcombine.high %v1933_v62, %v1937_v57 }
 0x1a1   :  { %3548 = vmatpush3.msra.mxu1 %v810_v52  ;;  %3555 = vmatpush3.msra.mxu0 %v885_v54  ;;  %v3992_v17 = vld [vmem:[#allocation2 + $0xb0] sm:$0xff]  ;;  %v1938_v50 = vld [vmem:[#allocation2 + $0xc0] sm:$0xff] }
 0x1a2   :  { %v3537_v13 = vpop.f32.mrf.mxu1  ;;  %3550 = vmatmul.mubr.msk.f32.vlgmr.msra.gmra.mxu1 %vm25_vm0, %v3831_v59  ;;  %3557 = vmatmul.mubr.msk.f32.vlgmr.msra.gmra.mxu0 %vm25_vm0, %v3831_v59  ;;  %v4013_v26 = vrot.slane %v2599_v14, %v3775_v25  ;;  %v2123_v27 = vcombine.high %v1932_v23, %v3992_v17 }
 0x1a3   :  { %977 = vst.msk [vmem:[#allocation2 + $0xf8] sm:$0xff] %vm25_vm0, %v3537_v13  ;;  %3559 = vmatprep.subr.mxu1 %v3537_v13  ;;  %3566 = vmatprep.subr.mxu0 %v3673_v0 }
 0x1a4   :  { %v960_v18 = vpop.f32.mrf.mxu1  ;;  %3560 = vmatpush3.msra.mxu1 %v3537_v13  ;;  %3567 = vmatpush3.msra.mxu0 %v3673_v0  ;;  %v4008_v0 = vrot.slane %v2598_v10, %v3775_v25  ;;  %v4043_v47 = vrot.slane %v2123_v27, %v3775_v25 }
 0x1a5   :  { %976 = vst.msk [vmem:[#allocation2 + $0xf0] sm:$0xff] %vm25_vm0, %v960_v18  ;;  %3561 = vmatprep.subr.mxu1 %v960_v18  ;;  %3568 = vmatprep.subr.mxu0 %v3683_v2  ;;  %v1943_v22 = vld [vmem:[#allocation2 + $0xe8] sm:$0xff]  ;;  %v1941_v42 = vld [vmem:[#allocation2 + $0xd8] sm:$0xff] }
 0x1a6   :  { %3562 = vmatpush3.msra.mxu1 %v960_v18  ;;  %3563 = vmatprep.mubr.msk.f32.mxu1 %vm25_vm0, %v3825_v58  ;;  %v2614_v36 = vcombine.low %v1939_v8, %v1943_v22  ;;  %v4025_v58 = vrot.slane %v2583_v19, %v3775_v25  ;;  %v2615_v37 = vcombine.high %v1939_v8, %v1943_v22 }
 0x1a7   :  { %3569 = vmatpush3.msra.mxu0 %v3683_v2  ;;  %3570 = vmatprep.mubr.msk.f32.mxu0 %vm25_vm0, %v3998_v11  ;;  %v2647_v2 = vcombine.high %v2590_v35, %v4008_v0  ;;  %v1942_v40 = vld [vmem:[#allocation2 + $0xe0] sm:$0xff]  ;;  %v2646_v44 = vcombine.low %v2590_v35, %v4008_v0  ;;  %v1940_v51 = vld [vmem:[#allocation2 + $0xd0] sm:$0xff]  ;;  %v2187_v0 = vcombine.high %v4028_v39, %v4043_v47 }
 0x1a8   :  { %3564 = vmatmul.mubr.msk.f32.vlgmr.msra.gmra.mxu1 %vm25_vm0, %v3831_v59  ;;  %3571 = vmatmul.mubr.msk.f32.vlgmr.msra.gmra.mxu0 %vm25_vm0, %v4005_v21  ;;  %v2122_v59 = vcombine.low %v1932_v23, %v3992_v17  ;;  %v2662_v45 = vcombine.low %v4025_v58, %v4013_v26  ;;  %v2622_v48 = vrot.slane %v2614_v36, %v3775_v25 }
 0x1a9   :  { %3573 = vmatprep.subr.mxu1 %v3710_v5  ;;  %3580 = vmatprep.subr.mxu0 %v3678_v1  ;;  %v2139_v54 = vcombine.high %v1938_v50, %v1942_v40  ;;  %v2138_v57 = vcombine.low %v1938_v50, %v1942_v40  ;;  %v2661_v63 = vrot.slane %v2647_v2, %v3819_v55 }
 0x1aa   :  { %3574 = vmatpush3.msra.mxu1 %v3710_v5  ;;  %3581 = vmatpush3.msra.mxu0 %v3678_v1  ;;  %v1945_v43 = vld [vmem:[#allocation2 + $0xf8] sm:$0xff]  ;;  %v4052_v1 = vrot.slane %v2615_v37, %v3775_v25  ;;  %v4065_v10 = vrot.slane %v2122_v59, %v3775_v25  ;;  %v4080_v8 = vrot.slane %v2646_v44, %v3819_v55 }
 0x1ab   :  { %3575 = vmatprep.subr.mxu1 %v3715_v6  ;;  %3582 = vmatprep.subr.mxu0 %v3696_v3  ;;  %v2630_v49 = vcombine.low %v1941_v42, %v1945_v43  ;;  %v2631_v5 = vcombine.high %v1941_v42, %v1945_v43  ;;  %v2146_v16 = vrot.slane %v2138_v57, %v3775_v25 }
 0x1ac   :  { %3576 = vmatpush3.msra.mxu1 %v3715_v6  ;;  %3577 = vmatprep.mubr.msk.f32.mxu1 %vm25_vm0, %v3998_v11  ;;  %v1944_v52 = vld [vmem:[#allocation2 + $0xf0] sm:$0xff]  ;;  %v2170_v20 = vcombine.low %v4034_v41, %v4065_v10  ;;  %v2670_v36 = vrot.slane %v2662_v45, %v3819_v55  ;;  %v4109_v42 = vrot.slane %v2187_v0, %v3819_v55 }
 0x1ad   :  { %3583 = vmatpush3.msra.mxu0 %v3696_v3  ;;  %3584 = vmatprep.mubr.msk.f32.mxu0 %vm25_vm0, %v3998_v11  ;;  %v2638_v61 = vrot.slane %v2630_v49, %v3775_v25  ;;  %v2645_v62 = vrot.slane %v2631_v5, %v3775_v25  ;;  %v2155_v6 = vcombine.high %v1940_v51, %v1944_v52 }
 0x1ae   :  { %3578 = vmatmul.mubr.msk.f32.vlgmr.msra.gmra.mxu1 %vm25_vm0, %v4005_v21  ;;  %3585 = vmatmul.mubr.msk.f32.vlgmr.msra.gmra.mxu0 %vm25_vm0, %v4005_v21  ;;  %v2154_v3 = vcombine.low %v1940_v51, %v1944_v52  ;;  %v2178_v59 = vrot.slane %v2170_v20, %v3819_v55  ;;  %v2663_v5 = vcombine.high %v4025_v58, %v4013_v26 }
 0x1af   :  { %3587 = vmatprep.subr.mxu1 %v3720_v7  ;;  %3591 = vmatprep.mubr.msk.f32.mxu1 %vm25_vm0, %v3998_v11  ;;  %v2679_v33 = vcombine.high %v2622_v48, %v2638_v61  ;;  %v2678_v13 = vcombine.low %v2622_v48, %v2638_v61  ;;  %v2694_v14 = vcombine.low %v4052_v1, %v2645_v62 }
 0x1b0   :  { %3588 = vmatpush3.msra.mxu1 %v3720_v7  ;;  %v2169_v15 = vrot.slane %v2155_v6, %v3775_v25  ;;  %v2162_v17 = vrot.slane %v2154_v3, %v3775_v25  ;;  %3598 = vmatprep.mubr.msk.f32.mxu0 %vm25_vm0, %v3998_v11  ;;  %v2153_v7 = vrot.slane %v2139_v54, %v3775_v25 }
 0x1b1   :  { %3589 = vmatprep.subr.mxu1 %v3738_v9  ;;  %v2693_v18 = vrot.slane %v2679_v33, %v3819_v55  ;;  %v4083_v19 = vrot.slane %v2678_v13, %v3819_v55  ;;  %v2702_v27 = vrot.slane %v2694_v14, %v3819_v55  ;;  %v2695_v40 = vcombine.high %v4052_v1, %v2645_v62 }
 0x1b2   :  { %3590 = vmatpush3.msra.mxu1 %v3738_v9  ;;  %v2202_v22 = vcombine.low %v2146_v16, %v2162_v17  ;;  %v2218_v35 = vcombine.low %v2153_v7, %v2169_v15  ;;  %v2186_v9 = vcombine.low %v4028_v39, %v4043_v47  ;;  %v2219_v2 = vcombine.high %v2153_v7, %v2169_v15 }
 0x1b3   :  { %3592 = vmatmul.mubr.msk.f32.vlgmr.msra.gmra.mxu1 %vm25_vm0, %v4005_v21  ;;  %v2713_v23 = vcombine.high %v2661_v63, %v2693_v18  ;;  %v2711_v24 = vcombine.high %v4080_v8, %v4083_v19  ;;  %v2710_v43 = vcombine.low %v4080_v8, %v4083_v19  ;;  %v2714_v44 = vcombine.low %v2670_v36, %v2702_v27 }
 0x1b4   :  { %3605 = vmatprep.mubr.msk.f32.mxu1 %vm25_vm0, %v3998_v11  ;;  %v4104_v37 = vrot.slane %v2202_v22, %v3819_v55  ;;  %v2712_v45 = vcombine.low %v2661_v63, %v2693_v18  ;;  %v2226_v48 = vrot.slane %v2218_v35, %v3819_v55  ;;  %v4115_v39 = vrot.slane %v2219_v2, %v3819_v55 }
 0x1b5   :  { %3072 = vrot.lane.b32.xlu1 %v2713_v23, %s3638_s14  ;;  %3040 = vrot.lane.b32.xlu0 %v2711_v24, %s3636_s12  ;;  %v2194_v49 = vrot.slane %v2186_v9, %v3819_v55  ;;  %v2715_v1 = vcombine.high %v2670_v36, %v2702_v27  ;;  %v2709_v52 = vrot.slane %v2695_v40, %v3819_v55 }
 0x1b6   :  { %v2234_v47 = vcombine.low %v2178_v59, %v4104_v37  ;;  %v2241_v50 = vcombine.high %v4109_v42, %v4115_v39  ;;  %v2677_v54 = vrot.slane %v2663_v5, %v3819_v55  ;;  %v2203_v58 = vcombine.high %v2146_v16, %v2162_v17 }
 0x1b7   :  { %v2238_v51 = vcombine.low %v2194_v49, %v2226_v48  ;;  %v2239_v61 = vcombine.high %v2194_v49, %v2226_v48  ;;  %v2171_v62 = vcombine.high %v4034_v41, %v4065_v10  ;;  %v2235_v6 = vcombine.high %v2178_v59, %v4104_v37  ;;  %v4143_v41 = vpop.permute.xlu1 %2958  ;;  %v4145_v10 = vpop.permute.xlu0 %2974 }
 0x1b8   :  { %v2716_v57 = vcombine.low %v2677_v54, %v2709_v52  ;;  %v2717_v26 = vcombine.high %v2677_v54, %v2709_v52  ;;  %v2217_v63 = vrot.slane %v2203_v58, %v3819_v55  ;;  %v2240_v14 = vcombine.low %v4109_v42, %v4115_v39 }
 0x1b9   :  { %3088 = vrot.lane.b32.xlu1 %v2714_v44, %s3639_s15  ;;  %3056 = vrot.lane.b32.xlu0 %v2712_v45, %s3637_s13  ;;  %v2185_v3 = vrot.slane %v2171_v62, %v3819_v55 }
 0x1bb   :  { %v2236_v33 = vcombine.low %v2185_v3, %v2217_v63  ;;  %v2237_v13 = vcombine.high %v2185_v3, %v2217_v63 }
 0x1bd   :  { %3104 = vrot.lane.b32.xlu1 %v2715_v1, %s3640_s16  ;;  %2976 = vrot.lane.b32.xlu0 %v2238_v51, %s3639_s15 }
 0x1c1   :  { %3120 = vrot.lane.b32.xlu1 %v2716_v57, %s3641_s1  ;;  %2992 = vrot.lane.b32.xlu0 %v2239_v61, %s3640_s16 }
 0x1c5   :  { %3136 = vrot.lane.b32.xlu1 %v2717_v26, %s3642_s21 }
 0x1c9   :  { %2928 = vrot.lane.b32.xlu1 %v2235_v6, %s3636_s12 }
 0x1cd   :  { %2944 = vrot.lane.b32.xlu1 %v2236_v33, %s3637_s13 }
 0x1d1   :  { %2960 = vrot.lane.b32.xlu1 %v2237_v13, %s3638_s14 }
 0x1d5   :  { %3008 = vrot.lane.b32.xlu1 %v2240_v14, %s3641_s1 }
 0x227   :  { %v3073_v15 = vpop.permute.xlu1 %3072  ;;  %v3041_v16 = vpop.permute.xlu0 %3040 }
 0x228   :  { %v3181_v17 = vsel %vm25_vm0, %v2710_v43, %v3041_v16 }
 0x22b   :  { %v3089_v18 = vpop.permute.xlu1 %3088  ;;  %v3057_v8 = vpop.permute.xlu0 %3056 }
 0x22c   :  { %v3185_v19 = vsel %vm3150_vm1, %v3181_v17, %v3057_v8 }
 0x22d   :  { %v3189_v7 = vsel %vm3155_vm2, %v3185_v19, %v3073_v15 }
 0x22e   :  { %v3193_v20 = vsel %vm3160_vm3, %v3189_v7, %v3089_v18 }
 0x22f   :  { %v3105_v22 = vpop.permute.xlu1 %3104  ;;  %v2977_v59 = vpop.permute.xlu0 %2976 }
 0x230   :  { %v3197_v0 = vsel %vm3165_vm4, %v3193_v20, %v3105_v22 }
 0x233   :  { %v3121_v23 = vpop.permute.xlu1 %3120  ;;  %v2993_v60 = vpop.permute.xlu0 %2992 }
 0x234   :  { %v3201_v24 = vsel %vm3170_vm5, %v3197_v0, %v3121_v23 }
 0x237   :  { %v3137_v27 = vpop.permute.xlu1 %3136 }
 0x238   :  { %v4154_v35 = vsel %vm3175_vm6, %v3201_v24, %v3137_v27 }
 0x23b   :  { %v2929_v36 = vpop.permute.xlu1 %2928 }
 0x23c   :  { %v3147_v9 = vsel %vm25_vm0, %v2234_v47, %v2929_v36 }
 0x23f   :  { %v2945_v37 = vpop.permute.xlu1 %2944 }
 0x240   :  { %v3152_v2 = vsel %vm3150_vm1, %v3147_v9, %v2945_v37 }
 0x243   :  { %v2961_v40 = vpop.permute.xlu1 %2960 }
 0x244   :  { %v3157_v43 = vsel %vm3155_vm2, %v3152_v2, %v2961_v40 }
 0x245   :  { %v4160_v44 = vsel %vm3160_vm3, %v3157_v43, %v2977_v59 }
 0x25c   :  { %v3544_v45 = vpop.f32.mrf.mxu0 }
 0x25d   :  { %1280 = vst.msk [vmem:[#allocation2 + $0x108] sm:$0xff] %vm25_vm0, %v3544_v45 }
 0x25e   :  { %v1044_v48 = vpop.f32.mrf.mxu0 }
 0x25f   :  { %1279 = vst.msk [vmem:[#allocation2 + $0x100] sm:$0xff] %vm25_vm0, %v1044_v48 }
 0x262   :  { %v3551_v49 = vpop.f32.mrf.mxu1  ;;  %v3558_v5 = vpop.f32.mrf.mxu0 }
 0x263   :  { %1282 = vst.msk [vmem:[#allocation2 + $0x118] sm:$0xff] %vm25_vm0, %v3551_v49  ;;  %1284 = vst.msk [vmem:[#allocation2 + $0x128] sm:$0xff] %vm25_vm0, %v3558_v5 }
 0x264   :  { %v1119_v47 = vpop.f32.mrf.mxu1  ;;  %v1194_v1 = vpop.f32.mrf.mxu0  ;;  %v1947_v3 = vld [vmem:[#allocation2 + $0x108] sm:$0xff] }
 0x265   :  { %1281 = vst.msk [vmem:[#allocation2 + $0x110] sm:$0xff] %vm25_vm0, %v1119_v47  ;;  %1283 = vst.msk [vmem:[#allocation2 + $0x120] sm:$0xff] %vm25_vm0, %v1194_v1 }
 0x266   :  { %v1946_v27 = vld [vmem:[#allocation2 + $0x100] sm:$0xff] }
 0x268   :  { %v3565_v51 = vpop.f32.mrf.mxu1  ;;  %v3572_v52 = vpop.f32.mrf.mxu0 }
 0x269   :  { %1286 = vst.msk [vmem:[#allocation2 + $0x138] sm:$0xff] %vm25_vm0, %v3565_v51  ;;  %1598 = vst.msk [vmem:[#allocation2 + $0x148] sm:$0xff] %vm25_vm0, %v3572_v52  ;;  %3594 = vmatprep.subr.mxu0 %v3572_v52 }
 0x26a   :  { %v1269_v54 = vpop.f32.mrf.mxu1  ;;  %v1362_v57 = vpop.f32.mrf.mxu0  ;;  %3595 = vmatpush3.msra.mxu0 %v3572_v52  ;;  %v1949_v33 = vld [vmem:[#allocation2 + $0x118] sm:$0xff]  ;;  %v1951_v13 = vld [vmem:[#allocation2 + $0x128] sm:$0xff] }
 0x26b   :  { %1285 = vst.msk [vmem:[#allocation2 + $0x130] sm:$0xff] %vm25_vm0, %v1269_v54  ;;  %1597 = vst.msk [vmem:[#allocation2 + $0x140] sm:$0xff] %vm25_vm0, %v1362_v57  ;;  %3596 = vmatprep.subr.mxu0 %v1362_v57  ;;  %v2718_v18 = vcombine.low %v1947_v3, %v1951_v13  ;;  %v2719_v8 = vcombine.high %v1947_v3, %v1951_v13 }
 0x26c   :  { %3597 = vmatpush3.msra.mxu0 %v1362_v57  ;;  %v1950_v20 = vld [vmem:[#allocation2 + $0x120] sm:$0xff]  ;;  %v1948_v36 = vld [vmem:[#allocation2 + $0x110] sm:$0xff] }
 0x26d   :  { %3599 = vmatmul.mubr.msk.f32.vlgmr.msra.gmra.mxu0 %vm25_vm0, %v4005_v21  ;;  %v2726_v23 = vrot.slane %v2718_v18, %v3775_v25  ;;  %v4193_v24 = vrot.slane %v2719_v8, %v3775_v25  ;;  %v2242_v59 = vcombine.low %v1946_v27, %v1950_v20  ;;  %v2243_v3 = vcombine.high %v1946_v27, %v1950_v20 }
 0x26e   :  { %v3579_v61 = vpop.f32.mrf.mxu1  ;;  %v3586_v26 = vpop.f32.mrf.mxu0  ;;  %3612 = vmatprep.mubr.msk.f32.mxu0 %vm25_vm0, %v3998_v11 }
 0x26f   :  { %1600 = vst.msk [vmem:[#allocation2 + $0x158] sm:$0xff] %vm25_vm0, %v3579_v61  ;;  %1602 = vst.msk [vmem:[#allocation2 + $0x168] sm:$0xff] %vm25_vm0, %v3586_v26  ;;  %3601 = vmatprep.subr.mxu1 %v3579_v61  ;;  %3608 = vmatprep.subr.mxu0 %v3586_v26 }
 0x270   :  { %v1437_v58 = vpop.f32.mrf.mxu1  ;;  %v1512_v62 = vpop.f32.mrf.mxu0  ;;  %3602 = vmatpush3.msra.mxu1 %v3579_v61  ;;  %3609 = vmatpush3.msra.mxu0 %v3586_v26  ;;  %v1953_v6 = vld [vmem:[#allocation2 + $0x138] sm:$0xff]  ;;  %v1955_v16 = vld [vmem:[#allocation2 + $0x148] sm:$0xff] }
 0x271   :  { %1599 = vst.msk [vmem:[#allocation2 + $0x150] sm:$0xff] %vm25_vm0, %v1437_v58  ;;  %1601 = vst.msk [vmem:[#allocation2 + $0x160] sm:$0xff] %vm25_vm0, %v1512_v62  ;;  %3603 = vmatprep.subr.mxu1 %v1437_v58  ;;  %3610 = vmatprep.subr.mxu0 %v1512_v62  ;;  %v2734_v14 = vcombine.low %v1949_v33, %v1953_v6  ;;  %v2735_v19 = vcombine.high %v1949_v33, %v1953_v6 }
 0x272   :  { %3604 = vmatpush3.msra.mxu1 %v1437_v58  ;;  %3611 = vmatpush3.msra.mxu0 %v1512_v62  ;;  %v1952_v22 = vld [vmem:[#allocation2 + $0x130] sm:$0xff]  ;;  %v1954_v47 = vld [vmem:[#allocation2 + $0x140] sm:$0xff]  ;;  %v2250_v33 = vrot.slane %v2242_v59, %v3775_v25 }
 0x273   :  { %v3593_v63 = vpop.f32.mrf.mxu1  ;;  %3606 = vmatmul.mubr.msk.f32.vlgmr.msra.gmra.mxu1 %vm25_vm0, %v4005_v21  ;;  %3613 = vmatmul.mubr.msk.f32.vlgmr.msra.gmra.mxu0 %vm25_vm0, %v4005_v21  ;;  %v2742_v7 = vrot.slane %v2734_v14, %v3775_v25  ;;  %v4196_v40 = vrot.slane %v2735_v19, %v3775_v25  ;;  %v2258_v43 = vcombine.low %v1948_v36, %v1952_v22 }
 0x274   :  { %1604 = vst.msk [vmem:[#allocation2 + $0x178] sm:$0xff] %vm25_vm0, %v3593_v63  ;;  %3615 = vmatprep.subr.mxu1 %v3593_v63  ;;  %3619 = vmatprep.mubr.msk.f32.mxu1 %vm25_vm0, %v3998_v11 }
 0x275   :  { %v1587_v15 = vpop.f32.mrf.mxu1  ;;  %3616 = vmatpush3.msra.mxu1 %v3593_v63  ;;  %v2783_v48 = vcombine.high %v2726_v23, %v2742_v7  ;;  %v2782_v49 = vcombine.low %v2726_v23, %v2742_v7  ;;  %v2798_v63 = vcombine.low %v4193_v24, %v4196_v40  ;;  %v2266_v13 = vrot.slane %v2258_v43, %v3775_v25 }
 0x276   :  { %1603 = vst.msk [vmem:[#allocation2 + $0x170] sm:$0xff] %vm25_vm0, %v1587_v15  ;;  %3617 = vmatprep.subr.mxu1 %v1587_v15  ;;  %v1959_v17 = vld [vmem:[#allocation2 + $0x168] sm:$0xff]  ;;  %v1957_v37 = vld [vmem:[#allocation2 + $0x158] sm:$0xff]  ;;  %v2257_v23 = vrot.slane %v2243_v3, %v3775_v25 }
 0x277   :  { %3618 = vmatpush3.msra.mxu1 %v1587_v15  ;;  %v2750_v11 = vcombine.low %v1955_v16, %v1959_v17  ;;  %v2751_v0 = vcombine.high %v1955_v16, %v1959_v17  ;;  %v2797_v18 = vrot.slane %v2783_v48, %v3819_v55  ;;  %v4213_v20 = vrot.slane %v2782_v49, %v3819_v55 }
 0x278   :  { %3620 = vmatmul.mubr.msk.f32.vlgmr.msra.gmra.mxu1 %vm25_vm0, %v4005_v21  ;;  %v1958_v9 = vld [vmem:[#allocation2 + $0x160] sm:$0xff]  ;;  %v2259_v21 = vcombine.high %v1948_v36, %v1952_v22  ;;  %v1956_v52 = vld [vmem:[#allocation2 + $0x150] sm:$0xff]  ;;  %v2306_v27 = vcombine.low %v2250_v33, %v2266_v13  ;;  %v2806_v59 = vrot.slane %v2798_v63, %v3819_v55 }
 0x279   :  { %v2758_v1 = vrot.slane %v2750_v11, %v3775_v25  ;;  %v2765_v51 = vrot.slane %v2751_v0, %v3775_v25  ;;  %v2275_v57 = vcombine.high %v1954_v47, %v1958_v9  ;;  %v2274_v61 = vcombine.low %v1954_v47, %v1958_v9 }
 0x27a   :  { %v2273_v8 = vrot.slane %v2259_v21, %v3775_v25  ;;  %v4230_v48 = vrot.slane %v2306_v27, %v3819_v55 }
 0x27b   :  { %v1961_v2 = vld [vmem:[#allocation2 + $0x178] sm:$0xff]  ;;  %v2282_v19 = vrot.slane %v2274_v61, %v3775_v25  ;;  %v2289_v0 = vrot.slane %v2275_v57, %v3775_v25  ;;  %v2799_v61 = vcombine.high %v4193_v24, %v4196_v40  ;;  %v2307_v24 = vcombine.high %v2250_v33, %v2266_v13 }
 0x27c   :  { %v2766_v45 = vcombine.low %v1957_v37, %v1961_v2  ;;  %v2767_v5 = vcombine.high %v1957_v37, %v1961_v2  ;;  %v2323_v43 = vcombine.high %v2257_v23, %v2273_v8  ;;  %v2322_v27 = vcombine.low %v2257_v23, %v2273_v8 }
 0x27d   :  { %v1960_v54 = vld [vmem:[#allocation2 + $0x170] sm:$0xff] }
 0x27e   :  { %v2774_v26 = vrot.slane %v2766_v45, %v3775_v25  ;;  %v2781_v58 = vrot.slane %v2767_v5, %v3775_v25  ;;  %v2291_v62 = vcombine.high %v1956_v52, %v1960_v54  ;;  %v2290_v6 = vcombine.low %v1956_v52, %v1960_v54 }
 0x27f   :  { %v2337_v57 = vrot.slane %v2323_v43, %v3819_v55  ;;  %v2330_v33 = vrot.slane %v2322_v27, %v3819_v55 }
 0x280   :  { %v2815_v14 = vcombine.high %v2758_v1, %v2774_v26  ;;  %v2814_v15 = vcombine.low %v2758_v1, %v2774_v26  ;;  %v2830_v16 = vcombine.low %v2765_v51, %v2781_v58  ;;  %v2305_v17 = vrot.slane %v2291_v62, %v3775_v25 }
 0x281   :  { %v2298_v7 = vrot.slane %v2290_v6, %v3775_v25  ;;  %v2831_v52 = vcombine.high %v2765_v51, %v2781_v58  ;;  %v2813_v51 = vrot.slane %v2799_v61, %v3819_v55 }
 0x282   :  { %v2829_v22 = vrot.slane %v2815_v14, %v3819_v55  ;;  %v4216_v11 = vrot.slane %v2814_v15, %v3819_v55  ;;  %v2838_v2 = vrot.slane %v2830_v16, %v3819_v55  ;;  %v2355_v21 = vcombine.high %v2289_v0, %v2305_v17 }
 0x283   :  { %v2338_v36 = vcombine.low %v2282_v19, %v2298_v7  ;;  %v2845_v6 = vrot.slane %v2831_v52, %v3819_v55  ;;  %v2339_v14 = vcombine.high %v2282_v19, %v2298_v7  ;;  %v2321_v16 = vrot.slane %v2307_v24, %v3819_v55 }
 0x284   :  { %v2849_v9 = vcombine.high %v2797_v18, %v2829_v22  ;;  %v2847_v37 = vcombine.high %v4213_v20, %v4216_v11  ;;  %v2846_v49 = vcombine.low %v4213_v20, %v4216_v11  ;;  %v2850_v5 = vcombine.low %v2806_v59, %v2838_v2 }
 0x285   :  { %v4227_v45 = vrot.slane %v2338_v36, %v3819_v55  ;;  %v2848_v47 = vcombine.low %v2797_v18, %v2829_v22  ;;  %v2369_v1 = vrot.slane %v2355_v21, %v3819_v55  ;;  %v2851_v62 = vcombine.high %v2806_v59, %v2838_v2 }
 0x286   :  { %3074 = vrot.lane.b32.xlu1 %v2849_v9, %s3638_s14  ;;  %3042 = vrot.lane.b32.xlu0 %v2847_v37, %s3636_s12  ;;  %v2852_v63 = vcombine.low %v2813_v51, %v2845_v6  ;;  %v2853_v3 = vcombine.high %v2813_v51, %v2845_v6  ;;  %v2353_v15 = vrot.slane %v2339_v14, %v3819_v55  ;;  %v3643_v9 = vmov 0.0  }
 0x287   :  { %v2370_v54 = vcombine.low %v4230_v48, %v4227_v45  ;;  %v2376_v26 = vcombine.low %v2337_v57, %v2369_v1  ;;  %v2377_v58 = vcombine.high %v2337_v57, %v2369_v1  ;;  %v2371_v40 = vcombine.high %v4230_v48, %v4227_v45  ;;  %3290 = vmatprep.mubr.f32.mxu0 %v3643_v9 }
 0x288   :  { %v2372_v18 = vcombine.low %v2321_v16, %v2353_v15  ;;  %v2354_v22 = vcombine.low %v2289_v0, %v2305_v17  ;;  %v2373_v36 = vcombine.high %v2321_v16, %v2353_v15 }
 0x28a   :  { %3090 = vrot.lane.b32.xlu1 %v2850_v5, %s3639_s15  ;;  %3058 = vrot.lane.b32.xlu0 %v2848_v47, %s3637_s13  ;;  %v2362_v19 = vrot.slane %v2354_v22, %v3819_v55 }
 0x28c   :  { %v2374_v13 = vcombine.low %v2330_v33, %v2362_v19  ;;  %v2375_v7 = vcombine.high %v2330_v33, %v2362_v19 }
 0x28e   :  { %3010 = vrot.lane.b32.xlu1 %v2376_v26, %s3641_s1  ;;  %3106 = vrot.lane.b32.xlu0 %v2851_v62, %s3640_s16 }
 0x292   :  { %3026 = vrot.lane.b32.xlu1 %v2377_v58, %s3642_s21  ;;  %3122 = vrot.lane.b32.xlu0 %v2852_v63, %s3641_s1 }
 0x296   :  { %3138 = vrot.lane.b32.xlu0 %v2853_v3, %s3642_s21 }
 0x29a   :  { %2930 = vrot.lane.b32.xlu0 %v2371_v40, %s3636_s12 }
 0x29e   :  { %2946 = vrot.lane.b32.xlu0 %v2372_v18, %s3637_s13 }
 0x2a2   :  { %2962 = vrot.lane.b32.xlu0 %v2373_v36, %s3638_s14 }
 0x2a6   :  { %2978 = vrot.lane.b32.xlu0 %v2374_v13, %s3639_s15 }
 0x2aa   :  { %2994 = vrot.lane.b32.xlu0 %v2375_v7, %s3640_s16 }
 0x32d   :  { %v3600_v17 = vpop.f32.mrf.mxu0 }
 0x32e   :  { %1907 = vst.msk [vmem:[#allocation2 + $0x188] sm:$0xff] %vm25_vm0, %v3600_v17 }
 0x32f   :  { %v1671_v8 = vpop.f32.mrf.mxu0 }
 0x330   :  { %1906 = vst.msk [vmem:[#allocation2 + $0x180] sm:$0xff] %vm25_vm0, %v1671_v8 }
 0x333   :  { %v3607_v0 = vpop.f32.mrf.mxu1  ;;  %v3614_v23 = vpop.f32.mrf.mxu0 }
 0x334   :  { %1909 = vst.msk [vmem:[#allocation2 + $0x198] sm:$0xff] %vm25_vm0, %v3607_v0  ;;  %1911 = vst.msk [vmem:[#allocation2 + $0x1a8] sm:$0xff] %vm25_vm0, %v3614_v23 }
 0x335   :  { %v1746_v37 = vpop.f32.mrf.mxu1  ;;  %v1821_v2 = vpop.f32.mrf.mxu0  ;;  %v1963_v43 = vld [vmem:[#allocation2 + $0x188] sm:$0xff] }
 0x336   :  { %1908 = vst.msk [vmem:[#allocation2 + $0x190] sm:$0xff] %vm25_vm0, %v1746_v37  ;;  %1910 = vst.msk [vmem:[#allocation2 + $0x1a0] sm:$0xff] %vm25_vm0, %v1821_v2 }
 0x337   :  { %v1962_v40 = vld [vmem:[#allocation2 + $0x180] sm:$0xff] }
 0x338   :  { %v3621_v21 = vpop.f32.mrf.mxu1 }
 0x339   :  { %1913 = vst.msk [vmem:[#allocation2 + $0x1b8] sm:$0xff] %vm25_vm0, %v3621_v21 }
 0x33a   :  { %v1896_v59 = vpop.f32.mrf.mxu1 }
 0x33b   :  { %1912 = vst.msk [vmem:[#allocation2 + $0x1b0] sm:$0xff] %vm25_vm0, %v1896_v59  ;;  %v1967_v5 = vld [vmem:[#allocation2 + $0x1a8] sm:$0xff]  ;;  %v1965_v52 = vld [vmem:[#allocation2 + $0x198] sm:$0xff] }
 0x33c   :  { %v2854_v47 = vcombine.low %v1963_v43, %v1967_v5  ;;  %v2855_v1 = vcombine.high %v1963_v43, %v1967_v5 }
 0x33d   :  { %v1964_v6 = vld [vmem:[#allocation2 + $0x190] sm:$0xff]  ;;  %v1966_v51 = vld [vmem:[#allocation2 + $0x1a0] sm:$0xff] }
 0x33e   :  { %v2862_v62 = vrot.slane %v2854_v47, %v3775_v25  ;;  %v2869_v3 = vrot.slane %v2855_v1, %v3775_v25  ;;  %v2378_v22 = vcombine.low %v1962_v40, %v1966_v51  ;;  %v2379_v2 = vcombine.high %v1962_v40, %v1966_v51 }
 0x340   :  { %v1969_v57 = vld [vmem:[#allocation2 + $0x1b8] sm:$0xff]  ;;  %v2386_v7 = vrot.slane %v2378_v22, %v3775_v25  ;;  %v2393_v47 = vrot.slane %v2379_v2, %v3775_v25 }
 0x341   :  { %v2870_v61 = vcombine.low %v1965_v52, %v1969_v57  ;;  %v2871_v26 = vcombine.high %v1965_v52, %v1969_v57 }
 0x342   :  { %v1968_v58 = vld [vmem:[#allocation2 + $0x1b0] sm:$0xff] }
 0x343   :  { %v2878_v63 = vrot.slane %v2870_v61, %v3775_v25  ;;  %v2885_v14 = vrot.slane %v2871_v26, %v3775_v25  ;;  %v2394_v24 = vcombine.low %v1964_v6, %v1968_v58  ;;  %v2395_v17 = vcombine.high %v1964_v6, %v1968_v58 }
 0x345   :  { %v2887_v15 = vcombine.high %v2862_v62, %v2878_v63  ;;  %v2903_v16 = vcombine.high %v2869_v3, %v2885_v14  ;;  %v2886_v18 = vcombine.low %v2862_v62, %v2878_v63  ;;  %v2902_v27 = vcombine.low %v2869_v3, %v2885_v14 }
 0x346   :  { %v2402_v13 = vrot.slane %v2394_v24, %v3775_v25  ;;  %v2409_v5 = vrot.slane %v2395_v17, %v3775_v25 }
 0x347   :  { %v2901_v36 = vrot.slane %v2887_v15, %v3819_v55  ;;  %v2917_v19 = vrot.slane %v2903_v16, %v3819_v55  ;;  %v4276_v33 = vrot.slane %v2886_v18, %v3819_v55  ;;  %v2910_v8 = vrot.slane %v2902_v27, %v3819_v55 }
 0x348   :  { %v2411_v23 = vcombine.high %v2386_v7, %v2402_v13  ;;  %v2410_v37 = vcombine.low %v2386_v7, %v2402_v13  ;;  %v2426_v57 = vcombine.low %v2393_v47, %v2409_v5  ;;  %v2427_v26 = vcombine.high %v2393_v47, %v2409_v5 }
 0x349   :  { %3060 = vrot.lane.b32.xlu1 %v2901_v36, %s3637_s13  ;;  %3124 = vrot.lane.b32.xlu0 %v2917_v19, %s3641_s1  ;;  %v2918_v0 = vcombine.high %v4276_v33, %v3643_v9  ;;  %v2920_v59 = vcombine.high %v2910_v8, %v3643_v9  ;;  %v2919_v1 = vcombine.high %v2901_v36, %v3643_v9 }
 0x34a   :  { %v2425_v21 = vrot.slane %v2411_v23, %v3819_v55  ;;  %v4290_v43 = vrot.slane %v2410_v37, %v3819_v55  ;;  %v2434_v61 = vrot.slane %v2426_v57, %v3819_v55  ;;  %v2441_v25 = vrot.slane %v2427_v26, %v3819_v55 }
 0x34b   :  { %v2921_v62 = vcombine.high %v2917_v19, %v3643_v9 }
 0x34c   :  { %v2442_v52 = vcombine.high %v4290_v43, %v3643_v9  ;;  %v2443_v55 = vcombine.high %v2425_v21, %v3643_v9  ;;  %v2444_v46 = vcombine.high %v2434_v61, %v3643_v9  ;;  %v2445_v56 = vcombine.high %v2441_v25, %v3643_v9  ;;  %v4340_v9 = vpop.permute.xlu1 %3008 }
 0x34d   :  { %3092 = vrot.lane.b32.xlu1 %v2910_v8, %s3639_s15  ;;  %3044 = vrot.lane.b32.xlu0 %v2918_v0, %s3636_s12 }
 0x350   :  { %v3075_v51 = vpop.permute.xlu1 %3074 }
 0x351   :  { %2948 = vrot.lane.b32.xlu1 %v2425_v21, %s3637_s13  ;;  %3108 = vrot.lane.b32.xlu0 %v2920_v59, %s3640_s16 }
 0x354   :  { %v3091_v63 = vpop.permute.xlu1 %3090 }
 0x355   :  { %3076 = vrot.lane.b32.xlu1 %v2919_v1, %s3638_s14  ;;  %2932 = vrot.lane.b32.xlu0 %v2442_v52, %s3636_s12 }
 0x358   :  { %v3011_v14 = vpop.permute.xlu1 %3010 }
 0x359   :  { %2980 = vrot.lane.b32.xlu1 %v2434_v61, %s3639_s15  ;;  %2990 = vrot.lane.b32.xlu0 %v2103_v4, %s3640_s16  ;;  %v3644_v4 = vmov 0  }
 0x35a   :  { %3633 = vset.pattern.permute.xlu0 %v3644_v4 }
 0x35c   :  { %v3027_v24 = vpop.permute.xlu1 %3026 }
 0x35d   :  { %3012 = vrot.lane.b32.xlu1 %v2441_v25, %s3641_s1  ;;  %3118 = vrot.lane.b32.xlu0 %v2580_v12, %s3641_s1  ;;  %v3043_v12 = vpop.permute.xlu0 %3042 }
 0x35e   :  { %v3182_v59 = vsel %vm25_vm0, %v2846_v49, %v3043_v12 }
 0x361   :  { %3140 = vrot.lane.b32.xlu1 %v2921_v62, %s3642_s21  ;;  %3134 = vrot.lane.b32.xlu0 %v2581_v30, %s3642_s21  ;;  %v3059_v30 = vpop.permute.xlu0 %3058 }
 0x362   :  { %v3186_v5 = vsel %vm3150_vm1, %v3182_v59, %v3059_v30 }
 0x365   :  { %3024 = vrot.lane.b32.xlu1 %v2241_v50, %s3642_s21  ;;  %3212 = vperm.xlu0 %3633, %v3209_v53   ;;  %v3107_v42 = vpop.permute.xlu0 %3106  ;;  %v3167_v53 = vsel %vm3165_vm4, %v4160_v44, %v2993_v60 }
 0x369   :  { %2964 = vrot.lane.b32.xlu1 %v2443_v55, %s3638_s14  ;;  %v3123_v39 = vpop.permute.xlu0 %3122 }
 0x36d   :  { %2996 = vrot.lane.b32.xlu1 %v2444_v46, %s3640_s16  ;;  %v3139_v50 = vpop.permute.xlu0 %3138 }
 0x371   :  { %3028 = vrot.lane.b32.xlu1 %v2445_v56, %s3642_s21  ;;  %v2931_v6 = vpop.permute.xlu0 %2930 }
 0x372   :  { %v3148_v57 = vsel %vm25_vm0, %v2370_v54, %v2931_v6 }
 0x375   :  { %3006 = vrot.lane.b32.xlu1 %v2104_v28, %s3641_s1  ;;  %v2947_v58 = vpop.permute.xlu0 %2946 }
 0x376   :  { %v3153_v26 = vsel %vm3150_vm1, %v3148_v57, %v2947_v58 }
 0x379   :  { %3022 = vrot.lane.b32.xlu1 %v2105_v29, %s3642_s21  ;;  %v2963_v3 = vpop.permute.xlu0 %2962 }
 0x37a   :  { %v3158_v20 = vsel %vm3155_vm2, %v3153_v26, %v2963_v3 }
 0x37d   :  { %v2979_v28 = vpop.permute.xlu0 %2978 }
 0x37e   :  { %v3163_v11 = vsel %vm3160_vm3, %v3158_v20, %v2979_v28 }
 0x381   :  { %v2995_v40 = vpop.permute.xlu0 %2994 }
 0x382   :  { %v3168_v55 = vsel %vm3165_vm4, %v3163_v11, %v2995_v40 }
 0x383   :  { %v3173_v46 = vsel %vm3170_vm5, %v3168_v55, %v3011_v14 }
 0x384   :  { %v3178_v58 = vsel %vm3175_vm6, %v3173_v46, %v3027_v24 }
 0x3bb   :  { %v3061_v15 = vpop.permute.xlu1 %3060  ;;  %v3125_v32 = vpop.permute.xlu0 %3124 }
 0x3bf   :  { %v3093_v31 = vpop.permute.xlu1 %3092  ;;  %v3045_v29 = vpop.permute.xlu0 %3044 }
 0x3c0   :  { %v3183_v18 = vsel %vm25_vm0, %v4276_v33, %v3045_v29 }
 0x3c1   :  { %v3187_v27 = vsel %vm3150_vm1, %v3183_v18, %v3061_v15 }
 0x3c3   :  { %v2949_v16 = vpop.permute.xlu1 %2948  ;;  %v3109_v7 = vpop.permute.xlu0 %3108 }
 0x3c7   :  { %v3077_v22 = vpop.permute.xlu1 %3076  ;;  %v2933_v37 = vpop.permute.xlu0 %2932 }
 0x3c8   :  { %v3191_v36 = vsel %vm3155_vm2, %v3187_v27, %v3077_v22  ;;  %v3149_v21 = vsel %vm25_vm0, %v4290_v43, %v2933_v37  ;;  %v3190_v43 = vsel %vm3155_vm2, %v3186_v5, %v3075_v51 }
 0x3c9   :  { %v3195_v13 = vsel %vm3160_vm3, %v3191_v36, %v3093_v31  ;;  %v3154_v52 = vsel %vm3150_vm1, %v3149_v21, %v2949_v16  ;;  %v3194_v62 = vsel %vm3160_vm3, %v3190_v43, %v3091_v63  ;;  %v3172_v63 = vsel %vm3170_vm5, %v3167_v53, %v4340_v9 }
 0x3ca   :  { %v3199_v8 = vsel %vm3165_vm4, %v3195_v13, %v3109_v7  ;;  %v3198_v54 = vsel %vm3165_vm4, %v3194_v62, %v3107_v42  ;;  %v3156_v42 = vsel %vm3155_vm2, %v3966_v38, %v4143_v41 }
 0x3cb   :  { %v2981_v19 = vpop.permute.xlu1 %2980  ;;  %v3203_v23 = vsel %vm3170_vm5, %v3199_v8, %v3125_v32  ;;  %v2991_v47 = vpop.permute.xlu0 %2990  ;;  %v3202_v12 = vsel %vm3170_vm5, %v3198_v54, %v3123_v39 }
 0x3cc   :  { %v3206_v6 = vsel %vm3175_vm6, %v3202_v12, %v3139_v50  ;;  %v3161_v50 = vsel %vm3160_vm3, %v3156_v42, %v4145_v10 }
 0x3cd   :  { %v3166_v41 = vsel %vm3165_vm4, %v3161_v50, %v2991_v47 }
 0x3cf   :  { %v3013_v17 = vpop.permute.xlu1 %3012  ;;  %v3119_v45 = vpop.permute.xlu0 %3118 }
 0x3d0   :  { %v3200_v60 = vsel %vm3170_vm5, %v3962_v34, %v3119_v45  ;;  %v3208_v34 = vld [vmem:[%s4409_s2] sm:$0xff] }
 0x3d3   :  { %v3141_v0 = vpop.permute.xlu1 %3140  ;;  %v3135_v51 = vpop.permute.xlu0 %3134 }
 0x3d4   :  { %v3207_v2 = vsel %vm3175_vm6, %v3203_v23, %v3141_v0  ;;  %v3204_v38 = vsel %vm3175_vm6, %v3200_v60, %v3135_v51 }
 0x3d5   :  { %3355 = vmatprep.subr.msk.mxu0 %vm3219_vm7, %v3207_v2 }
 0x3d7   :  { %v3025_v33 = vpop.permute.xlu1 %3024 }
 0x3d8   :  { %v3177_v39 = vsel %vm3175_vm6, %v3172_v63, %v3025_v33 }
 0x3db   :  { %v2965_v1 = vpop.permute.xlu1 %2964 }
 0x3dc   :  { %v3159_v61 = vsel %vm3155_vm2, %v3154_v52, %v2965_v1 }
 0x3dd   :  { %v3164_v25 = vsel %vm3160_vm3, %v3159_v61, %v2981_v19 }
 0x3df   :  { %v2997_v49 = vpop.permute.xlu1 %2996 }
 0x3e0   :  { %v3169_v48 = vsel %vm3165_vm4, %v3164_v25, %v2997_v49 }
 0x3e1   :  { %v3174_v4 = vsel %vm3170_vm5, %v3169_v48, %v3013_v17 }
 0x3e3   :  { %v3029_v56 = vpop.permute.xlu1 %3028 }
 0x3e4   :  { %v3179_v30 = vsel %vm3175_vm6, %v3174_v4, %v3029_v56 }
 0x3e5   :  { %3356 = vmatpush1.msk.msra.mxu0 %vm3219_vm7, %v3179_v30 }
 0x3e6   :  { %3252 = vmatprep.subr.mxu0 %v3206_v6 }
 0x3e7   :  { %v3007_v44 = vpop.permute.xlu1 %3006  ;;  %3253 = vmatpush1.msra.mxu0 %v3178_v58 }
 0x3e8   :  { %3254 = vmatprep.subr.mxu0 %v4154_v35  ;;  %v3171_v9 = vsel %vm3170_vm5, %v3166_v41, %v3007_v44  ;;  %v3213_v35 = vpop.permute.xlu0 %3212 }
 0x3e9   :  { %3255 = vmatpush1.msra.mxu0 %v3177_v39 }
 0x3ea   :  { %3256 = vmatprep.subr.mxu0 %v3204_v38 }
 0x3eb   :  { %v3023_v3 = vpop.permute.xlu1 %3022 }
 0x3ec   :  { %v3176_v14 = vsel %vm3175_vm6, %v3171_v9, %v3023_v3 }
 0x3ed   :  { %3257 = vmatpush1.msra.mxu0 %v3176_v14 }
 0x3ee   :  { %3357 = vmatmul.mubr.msk.f32.vlgmr.msra.gmra.mxu0 %vm3215_vm8, %v3208_v34 }
 0x4ae   :  { %v3292_v10 = vpop.f32.mrf.mxu0 }
 0x4af   :  { %v3293_v28 = vadd.f32 %v3292_v10, %v3213_v35 }
 0x4b0   :  { %v3294_v24 = vpop.f32.mrf.mxu0 }
 0x4b1   :  { %3297 = vst [vmem:[%s4410_s4] sm:$0xff] %v3293_v28  ;;  %v3295_v40 = vadd.f32 %v3294_v24, %v3213_v35 }
 0x4b3   :  { %3298 = vst [vmem:[%s4410_s4 + $0x8] sm:$0xff] %v3295_v40 }

</bundles_post_ra>
